<compile_context>
chip_gen: v7x
topology: tpu7x:2x2x1
jax: 0.10.0
libtpu: 0.0.40
codegen_flags: <defaults>
</compile_context>

<pallas_src>
import functools

import jax
import jax.numpy as jnp
from jax.experimental import pallas as pl
from jax.experimental.pallas import tpu as pltpu


def _round_up(x, m):
    return (x + m - 1) // m * m


def mlp_diffusion_kernel(
    x_ref,                      # [TM, H]   bf16  (batch tile)
    t_ref,                      # [TM, 1]   int32 (batch tile)
    w1_ref, w2_ref, w3_ref,     # bf16 weights, resident
    w4_ref,                     # [U, H]    bf16, resident
    b4_ref,                     # [1, H]    f32,  resident
    e1_ref, e2_ref, e3_ref,     # [Np, U]   f32,  resident (emb + layer bias)
    out_ref,                    # [TM, H]   f32
):
    tm = x_ref.shape[0]
    n_steps_p = e1_ref.shape[0]

    # Exact per-row timestep-embedding gather: one-hot(t) @ table on the MXU.
    steps = jax.lax.broadcasted_iota(jnp.int32, (tm, n_steps_p), 1)
    onehot = (steps == t_ref[...]).astype(jnp.float32)          # [TM, Np]

    def emb(table_ref):
        return jnp.dot(onehot, table_ref[...],
                       preferred_element_type=jnp.float32)      # [TM, U]

    # Block 1: Linear (bf16 MXU inputs, f32 accumulation) -> +(b + emb[t]) -> ReLU
    h = jnp.dot(x_ref[...], w1_ref[...], preferred_element_type=jnp.float32)
    h = jnp.maximum(h + emb(e1_ref), 0.0)

    # Block 2
    h = jnp.dot(h.astype(jnp.bfloat16), w2_ref[...],
                preferred_element_type=jnp.float32)
    h = jnp.maximum(h + emb(e2_ref), 0.0)

    # Block 3
    h = jnp.dot(h.astype(jnp.bfloat16), w3_ref[...],
                preferred_element_type=jnp.float32)
    h = jnp.maximum(h + emb(e3_ref), 0.0)

    # Final Linear (no activation), unpadded output + bias.
    out = jnp.dot(h.astype(jnp.bfloat16), w4_ref[...],
                  preferred_element_type=jnp.float32)
    out_ref[...] = (out + b4_ref[...]).astype(out_ref.dtype)


def prepare_params(params):
    """One-time parameter prep (call OUTSIDE the jitted forward).

    bf16 weight casts, layer-bias fold into the embedding tables, and padding
    of n_steps up to a multiple of 128 (padded rows are never selected).
    """
    n_steps = params["emb1"].shape[0]
    n_steps_p = _round_up(n_steps, 128)

    def fold(emb, b):
        tab = (emb + b).astype(jnp.float32)
        return jnp.pad(tab, ((0, n_steps_p - n_steps), (0, 0)))

    return dict(
        w1=params["w1"].astype(jnp.bfloat16),
        w2=params["w2"].astype(jnp.bfloat16),
        w3=params["w3"].astype(jnp.bfloat16),
        w4=params["w4"].astype(jnp.bfloat16),
        b4=params["b4"].astype(jnp.float32),
        e1=fold(params["emb1"], params["b1"]),
        e2=fold(params["emb2"], params["b2"]),
        e3=fold(params["emb3"], params["b3"]),
    )


@functools.partial(jax.jit, static_argnames=("block_m",))
def mlp_diffusion_forward(x, t, prep, *, block_m=512):
    """x: [B, hidden_state] f32, t: [B] int32, prep: prepare_params() output."""
    B, H = x.shape
    U = prep["w1"].shape[1]
    Np = prep["e1"].shape[0]

    # --- batch tiling ------------------------------------------------------
    # Single tile when the batch fits (block == full extent, any B);
    # two tiles for block_m < B <= 2*block_m (keeps both v7x TCs busy);
    # otherwise block_m-row tiles (multiple of 16 -> bf16-tiling safe).
    if B <= block_m:
        tm = max(8, _round_up(B, 8))
    elif B <= 2 * block_m:
        tm = _round_up((B + 1) // 2, 16)
    else:
        tm = block_m
    Bp = _round_up(B, tm)

    xb = x.astype(jnp.bfloat16)
    tb = t.astype(jnp.int32).reshape(B, 1)
    if Bp != B:
        xb = jnp.pad(xb, ((0, Bp - B), (0, 0)))
        tb = jnp.pad(tb, ((0, Bp - B), (0, 0)))
    num_blocks = Bp // tm

    row = lambda i: (i, 0)     # batch-tiled operands (pipelined DMA)
    const = lambda i: (0, 0)   # resident operands (weights / biases / tables)

    out = pl.pallas_call(
        mlp_diffusion_kernel,
        out_shape=jax.ShapeDtypeStruct((Bp, H), jnp.float32),
        grid=(num_blocks,),
        in_specs=[
            pl.BlockSpec((tm, H), row),     # x
            pl.BlockSpec((tm, 1), row),     # t
            pl.BlockSpec((H, U), const),    # w1
            pl.BlockSpec((U, U), const),    # w2
            pl.BlockSpec((U, U), const),    # w3
            pl.BlockSpec((U, H), const),    # w4
            pl.BlockSpec((1, H), const),    # b4
            pl.BlockSpec((Np, U), const),   # emb1 + b1
            pl.BlockSpec((Np, U), const),   # emb2 + b2
            pl.BlockSpec((Np, U), const),   # emb3 + b3
        ],
        out_specs=pl.BlockSpec((tm, H), row),
        compiler_params=pltpu.CompilerParams(
            dimension_semantics=("parallel",),   # shard batch across TCs (v7x)
        ),
    )(xb, tb, prep["w1"], prep["w2"], prep["w3"], prep["w4"], prep["b4"],
      prep["e1"], prep["e2"], prep["e3"])

    return out if Bp == B else out[:B]


def init_params(key, n_steps, hidden_state, num_units):
    """Deterministic synthetic init matching the PyTorch module's shapes."""
    ks = jax.random.split(key, 11)

    def linear(kw, kb, fan_in, fan_out):
        bound = 1.0 / jnp.sqrt(fan_in)
        w = jax.random.uniform(kw, (fan_in, fan_out), jnp.float32, -bound, bound)
        b = jax.random.uniform(kb, (1, fan_out), jnp.float32, -bound, bound)
        return w, b

    w1, b1 = linear(ks[0], ks[1], hidden_state, num_units)
    w2, b2 = linear(ks[2], ks[3], num_units, num_units)
    w3, b3 = linear(ks[4], ks[5], num_units, num_units)
    w4, b4 = linear(ks[6], ks[7], num_units, hidden_state)

    emb1 = jax.random.normal(ks[8], (n_steps, num_units), jnp.float32)
    emb2 = jax.random.normal(ks[9], (n_steps, num_units), jnp.float32)
    emb3 = jax.random.normal(ks[10], (n_steps, num_units), jnp.float32)

    return dict(w1=w1, b1=b1, w2=w2, b2=b2, w3=w3, b3=b3, w4=w4, b4=b4,
                emb1=emb1, emb2=emb2, emb3=emb3)


def reference_forward(x, t, params, matmul_dtype=jnp.float32):
    """Pure-JAX reference mirroring the PyTorch forward.

    matmul_dtype=jnp.bfloat16 reproduces the kernel's MXU numerics
    (bf16 matmul inputs, f32 accumulation, f32 adds/ReLU).
    """
    e = [jnp.take(params["emb1"], t, axis=0),
         jnp.take(params["emb2"], t, axis=0),
         jnp.take(params["emb3"], t, axis=0)]
    ws = [(params["w1"], params["b1"]),
          (params["w2"], params["b2"]),
          (params["w3"], params["b3"])]
    h = x
    for (w, b), emb in zip(ws, e):
        h = jnp.dot(h.astype(matmul_dtype), w.astype(matmul_dtype),
                    preferred_element_type=jnp.float32)
        h = jnp.maximum(h + b + emb, 0.0)
    out = jnp.dot(h.astype(matmul_dtype), params["w4"].astype(matmul_dtype),
                  preferred_element_type=jnp.float32)
    return out + params["b4"]


if __name__ == "__main__":
    n_steps = 100
    hidden_state = 32
    num_units = 128
    batch = 8

    key = jax.random.PRNGKey(0)
    k_params, k_x, k_t = jax.random.split(key, 3)

    params = init_params(k_params, n_steps, hidden_state, num_units)
    x = jax.random.normal(k_x, (batch, hidden_state), jnp.float32)
    t = jax.random.randint(k_t, (batch,), 0, n_steps, jnp.int32)

    prep = prepare_params(params)          # one-time, outside the jitted path

    out = mlp_diffusion_forward(x, t, prep)
    out = jax.block_until_ready(out)
    assert out.shape == (batch, hidden_state)

    # Exact-numerics check against a reference that mirrors the kernel's
    # bf16-input / f32-accumulate matmuls (embedding gather is exact f32).
    ref_matched = reference_forward(x, t, params, matmul_dtype=jnp.bfloat16)
    assert jnp.allclose(out, ref_matched, atol=1e-3, rtol=1e-3), \
        "mismatch vs bf16-matched reference"

    # Loose sanity check against the pure-f32 PyTorch-equivalent forward
    # (difference is only bf16 input rounding on the matmuls).
    ref_f32 = reference_forward(x, t, params)
    assert jnp.allclose(out, ref_f32, atol=1e-1, rtol=1e-1), \
        "mismatch vs f32 reference"

    print("KERNEL_OK")
</pallas_src>

<mosaic_0001>
module attributes {stable_mosaic.version = 11 : i64} {
  func.func @mlp_diffusion_kernel(%arg0: i32, %arg1: memref<8x32xbf16, #tpu.memory_space<vmem>>, %arg2: memref<8x1xi32, #tpu.memory_space<vmem>>, %arg3: memref<32x128xbf16, #tpu.memory_space<vmem>>, %arg4: memref<128x128xbf16, #tpu.memory_space<vmem>>, %arg5: memref<128x128xbf16, #tpu.memory_space<vmem>>, %arg6: memref<128x32xbf16, #tpu.memory_space<vmem>>, %arg7: memref<1x32xf32, #tpu.memory_space<vmem>>, %arg8: memref<128x128xf32, #tpu.memory_space<vmem>>, %arg9: memref<128x128xf32, #tpu.memory_space<vmem>>, %arg10: memref<128x128xf32, #tpu.memory_space<vmem>>, %arg11: memref<8x32xf32, #tpu.memory_space<vmem>>) attributes {dimension_semantics = [#tpu.dimension_semantics<parallel>], iteration_bounds = array<i64: 1>, scalar_prefetch = 0 : i64, scratch_operands = 0 : i64, tpu.core_type = #tpu.core_type<tc>, window_params = [{transform_indices = @transform_0, window_bounds = array<i64: 8, 32>}, {transform_indices = @transform_1, window_bounds = array<i64: 8, 1>}, {pipeline_mode = #tpu.pipeline_mode<synchronous>, transform_indices = @transform_2, window_bounds = array<i64: 32, 128>}, {pipeline_mode = #tpu.pipeline_mode<synchronous>, transform_indices = @transform_3, window_bounds = array<i64: 128, 128>}, {pipeline_mode = #tpu.pipeline_mode<synchronous>, transform_indices = @transform_4, window_bounds = array<i64: 128, 128>}, {pipeline_mode = #tpu.pipeline_mode<synchronous>, transform_indices = @transform_5, window_bounds = array<i64: 128, 32>}, {pipeline_mode = #tpu.pipeline_mode<synchronous>, transform_indices = @transform_6, window_bounds = array<i64: 1, 32>}, {pipeline_mode = #tpu.pipeline_mode<synchronous>, transform_indices = @transform_7, window_bounds = array<i64: 128, 128>}, {pipeline_mode = #tpu.pipeline_mode<synchronous>, transform_indices = @transform_8, window_bounds = array<i64: 128, 128>}, {pipeline_mode = #tpu.pipeline_mode<synchronous>, transform_indices = @transform_9, window_bounds = array<i64: 128, 128>}, {transform_indices = @transform_10, window_bounds = array<i64: 8, 32>}]} {
    %0 = tpu.iota {dimensions = array<i32: 1>} : vector<8x128xi32>
    %c0 = arith.constant 0 : index
    %c0_0 = arith.constant 0 : index
    %1 = vector.load %arg2[%c0, %c0_0] : memref<8x1xi32, #tpu.memory_space<vmem>>, vector<8x1xi32>
    %2 = vector.broadcast %1 : vector<8x1xi32> to vector<8x128xi32>
    %3 = arith.cmpi eq, %0, %2 : vector<8x128xi32>
    %4 = arith.extui %3 : vector<8x128xi1> to vector<8x128xi32>
    %5 = arith.sitofp %4 : vector<8x128xi32> to vector<8x128xf32>
    %c0_1 = arith.constant 0 : index
    %c0_2 = arith.constant 0 : index
    %6 = vector.load %arg1[%c0_1, %c0_2] : memref<8x32xbf16, #tpu.memory_space<vmem>>, vector<8x32xbf16>
    %c0_3 = arith.constant 0 : index
    %c0_4 = arith.constant 0 : index
    %7 = vector.load %arg3[%c0_3, %c0_4] : memref<32x128xbf16, #tpu.memory_space<vmem>>, vector<32x128xbf16>
    %cst = arith.constant dense<0.000000e+00> : vector<8x128xf32>
    %8 = tpu.matmul %6, %7, %cst {dimension_numbers = #tpu.dot_dimension_numbers<[1], [0], [0], [1], [0, 0, 1, 1], [], []>} : vector<8x32xbf16>, vector<32x128xbf16>, vector<8x128xf32> -> vector<8x128xf32>
    %c0_5 = arith.constant 0 : index
    %c0_6 = arith.constant 0 : index
    %9 = vector.load %arg8[%c0_5, %c0_6] : memref<128x128xf32, #tpu.memory_space<vmem>>, vector<128x128xf32>
    %cst_7 = arith.constant dense<0.000000e+00> : vector<8x128xf32>
    %10 = tpu.matmul %5, %9, %cst_7 {dimension_numbers = #tpu.dot_dimension_numbers<[1], [0], [0], [1], [0, 0, 1, 1], [], []>} : vector<8x128xf32>, vector<128x128xf32>, vector<8x128xf32> -> vector<8x128xf32>
    %11 = arith.addf %8, %10 : vector<8x128xf32>
    %cst_8 = arith.constant 0.000000e+00 : f32
    %12 = vector.broadcast %cst_8 : f32 to vector<8x128xf32>
    %13 = arith.maximumf %11, %12 : vector<8x128xf32>
    %14 = arith.truncf %13 : vector<8x128xf32> to vector<8x128xbf16>
    %c0_9 = arith.constant 0 : index
    %c0_10 = arith.constant 0 : index
    %15 = vector.load %arg4[%c0_9, %c0_10] : memref<128x128xbf16, #tpu.memory_space<vmem>>, vector<128x128xbf16>
    %cst_11 = arith.constant dense<0.000000e+00> : vector<8x128xf32>
    %16 = tpu.matmul %14, %15, %cst_11 {dimension_numbers = #tpu.dot_dimension_numbers<[1], [0], [0], [1], [0, 0, 1, 1], [], []>} : vector<8x128xbf16>, vector<128x128xbf16>, vector<8x128xf32> -> vector<8x128xf32>
    %c0_12 = arith.constant 0 : index
    %c0_13 = arith.constant 0 : index
    %17 = vector.load %arg9[%c0_12, %c0_13] : memref<128x128xf32, #tpu.memory_space<vmem>>, vector<128x128xf32>
    %cst_14 = arith.constant dense<0.000000e+00> : vector<8x128xf32>
    %18 = tpu.matmul %5, %17, %cst_14 {dimension_numbers = #tpu.dot_dimension_numbers<[1], [0], [0], [1], [0, 0, 1, 1], [], []>} : vector<8x128xf32>, vector<128x128xf32>, vector<8x128xf32> -> vector<8x128xf32>
    %19 = arith.addf %16, %18 : vector<8x128xf32>
    %cst_15 = arith.constant 0.000000e+00 : f32
    %20 = vector.broadcast %cst_15 : f32 to vector<8x128xf32>
    %21 = arith.maximumf %19, %20 : vector<8x128xf32>
    %22 = arith.truncf %21 : vector<8x128xf32> to vector<8x128xbf16>
    %c0_16 = arith.constant 0 : index
    %c0_17 = arith.constant 0 : index
    %23 = vector.load %arg5[%c0_16, %c0_17] : memref<128x128xbf16, #tpu.memory_space<vmem>>, vector<128x128xbf16>
    %cst_18 = arith.constant dense<0.000000e+00> : vector<8x128xf32>
    %24 = tpu.matmul %22, %23, %cst_18 {dimension_numbers = #tpu.dot_dimension_numbers<[1], [0], [0], [1], [0, 0, 1, 1], [], []>} : vector<8x128xbf16>, vector<128x128xbf16>, vector<8x128xf32> -> vector<8x128xf32>
    %c0_19 = arith.constant 0 : index
    %c0_20 = arith.constant 0 : index
    %25 = vector.load %arg10[%c0_19, %c0_20] : memref<128x128xf32, #tpu.memory_space<vmem>>, vector<128x128xf32>
    %cst_21 = arith.constant dense<0.000000e+00> : vector<8x128xf32>
    %26 = tpu.matmul %5, %25, %cst_21 {dimension_numbers = #tpu.dot_dimension_numbers<[1], [0], [0], [1], [0, 0, 1, 1], [], []>} : vector<8x128xf32>, vector<128x128xf32>, vector<8x128xf32> -> vector<8x128xf32>
    %27 = arith.addf %24, %26 : vector<8x128xf32>
    %cst_22 = arith.constant 0.000000e+00 : f32
    %28 = vector.broadcast %cst_22 : f32 to vector<8x128xf32>
    %29 = arith.maximumf %27, %28 : vector<8x128xf32>
    %30 = arith.truncf %29 : vector<8x128xf32> to vector<8x128xbf16>
    %c0_23 = arith.constant 0 : index
    %c0_24 = arith.constant 0 : index
    %31 = vector.load %arg6[%c0_23, %c0_24] : memref<128x32xbf16, #tpu.memory_space<vmem>>, vector<128x32xbf16>
    %cst_25 = arith.constant dense<0.000000e+00> : vector<8x32xf32>
    %32 = tpu.matmul %30, %31, %cst_25 {dimension_numbers = #tpu.dot_dimension_numbers<[1], [0], [0], [1], [0, 0, 1, 1], [], []>} : vector<8x128xbf16>, vector<128x32xbf16>, vector<8x32xf32> -> vector<8x32xf32>
    %c0_26 = arith.constant 0 : index
    %c0_27 = arith.constant 0 : index
    %33 = vector.load %arg7[%c0_26, %c0_27] : memref<1x32xf32, #tpu.memory_space<vmem>>, vector<1x32xf32>
    %34 = vector.broadcast %33 : vector<1x32xf32> to vector<8x32xf32>
    %35 = arith.addf %32, %34 : vector<8x32xf32>
    %c0_28 = arith.constant 0 : index
    %c0_29 = arith.constant 0 : index
    %36 = vector.load %arg11[%c0_28, %c0_29] : memref<8x32xf32, #tpu.memory_space<vmem>>, vector<8x32xf32>
    tpu.vector_store %arg11[%c0_28, %c0_29], %35 {strides = array<i32>} : memref<8x32xf32, #tpu.memory_space<vmem>>, vector<8x32xf32>,
    return
  }
  func.func @transform_0(%arg0: i32) -> (i32, i32) {
    %c0_i32 = arith.constant 0 : i32
    %c0_i32_0 = arith.constant 0 : i32
    return %arg0, %c0_i32 : i32, i32
  }
  func.func @transform_1(%arg0: i32) -> (i32, i32) {
    %c0_i32 = arith.constant 0 : i32
    %c0_i32_0 = arith.constant 0 : i32
    return %arg0, %c0_i32 : i32, i32
  }
  func.func @transform_2(%arg0: i32) -> (i32, i32) {
    %c0_i32 = arith.constant 0 : i32
    %c0_i32_0 = arith.constant 0 : i32
    %c0_i32_1 = arith.constant 0 : i32
    return %c0_i32, %c0_i32_0 : i32, i32
  }
  func.func @transform_3(%arg0: i32) -> (i32, i32) {
    %c0_i32 = arith.constant 0 : i32
    %c0_i32_0 = arith.constant 0 : i32
    %c0_i32_1 = arith.constant 0 : i32
    return %c0_i32, %c0_i32_0 : i32, i32
  }
  func.func @transform_4(%arg0: i32) -> (i32, i32) {
    %c0_i32 = arith.constant 0 : i32
    %c0_i32_0 = arith.constant 0 : i32
    %c0_i32_1 = arith.constant 0 : i32
    return %c0_i32, %c0_i32_0 : i32, i32
  }
  func.func @transform_5(%arg0: i32) -> (i32, i32) {
    %c0_i32 = arith.constant 0 : i32
    %c0_i32_0 = arith.constant 0 : i32
    %c0_i32_1 = arith.constant 0 : i32
    return %c0_i32, %c0_i32_0 : i32, i32
  }
  func.func @transform_6(%arg0: i32) -> (i32, i32) {
    %c0_i32 = arith.constant 0 : i32
    %c0_i32_0 = arith.constant 0 : i32
    %c0_i32_1 = arith.constant 0 : i32
    return %c0_i32, %c0_i32_0 : i32, i32
  }
  func.func @transform_7(%arg0: i32) -> (i32, i32) {
    %c0_i32 = arith.constant 0 : i32
    %c0_i32_0 = arith.constant 0 : i32
    %c0_i32_1 = arith.constant 0 : i32
    return %c0_i32, %c0_i32_0 : i32, i32
  }
  func.func @transform_8(%arg0: i32) -> (i32, i32) {
    %c0_i32 = arith.constant 0 : i32
    %c0_i32_0 = arith.constant 0 : i32
    %c0_i32_1 = arith.constant 0 : i32
    return %c0_i32, %c0_i32_0 : i32, i32
  }
  func.func @transform_9(%arg0: i32) -> (i32, i32) {
    %c0_i32 = arith.constant 0 : i32
    %c0_i32_0 = arith.constant 0 : i32
    %c0_i32_1 = arith.constant 0 : i32
    return %c0_i32, %c0_i32_0 : i32, i32
  }
  func.func @transform_10(%arg0: i32) -> (i32, i32) {
    %c0_i32 = arith.constant 0 : i32
    %c0_i32_0 = arith.constant 0 : i32
    return %arg0, %c0_i32 : i32, i32
  }
}

</mosaic_0001>

<bundles_post_ra>
// kernel: mlp_diffusion_forward.1
= control target key start
LH: loop header
LB: loop body
LE: loop exit
PB: predicated region body
PF: predicated region fallthrough
CT: control target
= control target key end

     0   :  { %15 = vsyncpa [#allocation3], 0  ;;  %s1587_s0 = inlined_call_operand.vmem [shape: bf16[8,32], index: 0, kind: input, shape index: {}]   ;;  %s1588_s1 = inlined_call_operand.vmem [shape: s32[8,1], index: 1, kind: input, shape index: {}]   ;;  %s1589_s2 = inlined_call_operand.hbm [shape: bf16[32,128], index: 2, kind: input, shape index: {}]   ;;  %s1590_s3 = inlined_call_operand.vmem [shape: bf16[128,128], index: 3, kind: input, shape index: {}]   ;;  %s1591_s4 = inlined_call_operand.vmem [shape: bf16[128,128], index: 4, kind: input, shape index: {}]   ;;  %s1592_s5 = inlined_call_operand.vmem [shape: bf16[128,32], index: 5, kind: input, shape index: {}]   ;;  %s1593_s6 = inlined_call_operand.vmem [shape: f32[1,32], index: 6, kind: input, shape index: {}]   ;;  %s1594_s7 = inlined_call_operand.hbm [shape: f32[128,128], index: 7, kind: input, shape index: {}]   ;;  %s1595_s8 = inlined_call_operand.hbm [shape: f32[128,128], index: 8, kind: input, shape index: {}]   ;;  %s1596_s9 = inlined_call_operand.hbm [shape: f32[128,128], index: 9, kind: input, shape index: {}]   ;;  %s1597_s10 = inlined_call_operand.hbm [shape: f32[8,32], index: 10, kind: output, shape index: {}]  }
   0x1   :  { %16 = vsyncpa [#allocation6], 0 }
   0x2   :  { %17 = vsyncpa [#allocation9], 0 }
   0x3   :  { %18 = vsyncpa [#allocation4], 0  ;;  %s1280_s13 = smov [#allocation5]   ;;  %s1162_s17 = scalar_lea.hbm %s1594_s7, 2048 }
   0x4   :  { %s48_s14 = sshll.u32 %s1280_s13, 4  ;;  %p1163_p0 = scmp.ne.s32.totalorder %s1594_s7, %s1162_s17  ;;  %s49_s14 = int_to_ptr.vmem [resolvable:$true] %s48_s14 }
   0x5   :  { %p1166_p1 = scmp.lt.u32.totalorder %s1162_s17, %s1594_s7 }
   0x7   :  { %p1168_p2 = pnand %p1166_p1, %p1163_p0 }
   0x9   :  { %1171 = shalt.err (!%p1168_p2)
}
   0xa   :  { %s1172_s22 = scalar_lea.vmem %s49_s14, 2048  ;;  %p1177_p4 = scmp.lt.s32.totalorder %s49_s14, %s49_s14 }
   0xb   :  { %p1173_p3 = scmp.ne.s32.totalorder %s49_s14, %s1172_s22  ;;  %p1178_p5 = scmp.lt.s32.totalorder %s1172_s22, %s1172_s22 }
   0xd   :  { %p1179_p6 = por %p1178_p5, %p1177_p4 }
   0xf   :  { %p1180_p7 = pnand %p1179_p6, %p1173_p3 }
  0x11   :  { %1183 = shalt.err (!%p1180_p7)
}
  0x12   :  { %s1281_s23 = smov 128   ;;  %s1282_s24 = smov 8  }
  0x13   :  { %54 = dma.hbm_to_vmem [thread:$0]  %s1594_s7, 2048, %s49_s14, [#allocation6], %s1281_s23, %s1281_s23, %s1282_s24  }
  0x14   :  { %s1283_s27 = smov [#allocation2]   ;;  %s1184_s11 = scalar_lea.hbm %s1589_s2, 256 }
  0x15   :  { %s28_s28 = sshll.u32 %s1283_s27, 4  ;;  %p1185_p8 = scmp.ne.s32.totalorder %s1589_s2, %s1184_s11  ;;  %s29_s28 = int_to_ptr.vmem [resolvable:$true] %s28_s28 }
  0x16   :  { %p1188_p9 = scmp.lt.u32.totalorder %s1184_s11, %s1589_s2 }
  0x18   :  { %p1190_p10 = pnand %p1188_p9, %p1185_p8 }
  0x1a   :  { %1193 = shalt.err (!%p1190_p10)
}
  0x1b   :  { %s1194_s17 = scalar_lea.vmem %s29_s28, 256  ;;  %p1199_p12 = scmp.lt.s32.totalorder %s29_s28, %s29_s28 }
  0x1c   :  { %p1195_p11 = scmp.ne.s32.totalorder %s29_s28, %s1194_s17  ;;  %p1200_p13 = scmp.lt.s32.totalorder %s1194_s17, %s1194_s17 }
  0x1e   :  { %p1201_p0 = por %p1200_p13, %p1199_p12 }
  0x20   :  { %p1202_p1 = pnand %p1201_p0, %p1195_p11 }
  0x22   :  { %1205 = shalt.err (!%p1202_p1)
}
  0x23   :  { %s1284_s7 = smov 64   ;;  %s1285_s14 = smov 4  }
  0x24   :  { %34 = dma.hbm_to_vmem [thread:$0]  %s1589_s2, 256, %s29_s28, [#allocation3], %s1284_s7, %s1284_s7, %s1285_s14  }
  0x25   :  { %s1286_s20 = smov [#allocation7]   ;;  %s1287_s22 = smov [#allocation8]  }
  0x26   :  { %s60_s21 = sshll.u32 %s1286_s20, 4  ;;  %s72_s25 = sshll.u32 %s1287_s22, 4  ;;  %s61_s21 = int_to_ptr.vmem [resolvable:$true] %s60_s21  ;;  %s1376_s25 = int_to_ptr.vmem [resolvable:$true] %s72_s25 }
  0x27   :  { %s1206_s29 = scalar_lea.hbm %s1595_s8, 2048 }
  0x28   :  { %p1207_p2 = scmp.ne.s32.totalorder %s1595_s8, %s1206_s29  ;;  %p1210_p3 = scmp.lt.u32.totalorder %s1206_s29, %s1595_s8 }
  0x2a   :  { %p1212_p4 = pnand %p1210_p3, %p1207_p2 }
  0x2c   :  { %1215 = shalt.err (!%p1212_p4)
}
  0x2d   :  { %s1216_s2 = scalar_lea.vmem %s61_s21, 2048  ;;  %p1221_p6 = scmp.lt.s32.totalorder %s61_s21, %s61_s21 }
  0x2e   :  { %p1217_p5 = scmp.ne.s32.totalorder %s61_s21, %s1216_s2  ;;  %p1222_p7 = scmp.lt.s32.totalorder %s1216_s2, %s1216_s2 }
  0x30   :  { %p1223_p8 = por %p1222_p7, %p1221_p6 }
  0x32   :  { %p1224_p9 = pnand %p1223_p8, %p1217_p5 }
  0x34   :  { %1227 = shalt.err (!%p1224_p9)
}
  0x35   :  { %66 = dma.hbm_to_vmem [thread:$0]  %s1595_s8, 2048, %s61_s21, [#allocation6], %s1281_s23, %s1281_s23, %s1282_s24  }
  0x36   :  { %s1228_s7 = scalar_lea.hbm %s1596_s9, 2048 }
  0x37   :  { %p1229_p10 = scmp.ne.s32.totalorder %s1596_s9, %s1228_s7  ;;  %p1232_p11 = scmp.lt.u32.totalorder %s1228_s7, %s1596_s9 }
  0x39   :  { %p1234_p12 = pnand %p1232_p11, %p1229_p10 }
  0x3b   :  { %1237 = shalt.err (!%p1234_p12)
}
  0x3c   :  { %s1238_s22 = scalar_lea.vmem %s1376_s25, 2048  ;;  %p1243_p0 = scmp.lt.s32.totalorder %s1376_s25, %s1376_s25 }
  0x3d   :  { %p1239_p13 = scmp.ne.s32.totalorder %s1376_s25, %s1238_s22  ;;  %p1244_p1 = scmp.lt.s32.totalorder %s1238_s22, %s1238_s22 }
  0x3f   :  { %p1245_p2 = por %p1244_p1, %p1243_p0 }
  0x41   :  { %p1246_p3 = pnand %p1245_p2, %p1239_p13 }
  0x43   :  { %1249 = shalt.err (!%p1246_p3)
}
  0x44   :  { %78 = dma.hbm_to_vmem [thread:$0]  %s1596_s9, 2048, %s1376_s25, [#allocation9], %s1281_s23, %s1281_s23, %s1282_s24  }
  0x45   :  { %1272 = dma.done.wait [#allocation3], 256  }
  0x46   :  { %1273 = vsyncadd [#allocation3], 4294967040 }
  0x47   :  { %1274 = dma.done.wait [#allocation6], 4096  }
  0x48   :  { %1275 = vsyncadd [#allocation6], 4294963200 }
  0x49   :  { %1276 = dma.done.wait [#allocation9], 2048  }
  0x4a   :  { %1277 = vsyncadd [#allocation9], 4294965248  ;;  %v1288_v0 = vmov 0   ;;  %v1289_v1 = vmov 0.0   ;;  %vm1290_vm0 = vmmov 0   ;;  %v1291_v2 = vmov 0.0|0.0  }
  0x4b   :  { %1135 = vset.pattern.permute.xlu0 %v1288_v0  ;;  %911 = vmatprep.subr.bf16.mxu1 %v1289_v1  ;;  %v94_v3 = vld [vmem:[%s1588_s1] sm:$0xff]  ;;  %v1137_v5 = vld [vmem:[#allocation2 + $0x8] sm:$0xff]   ;;  %v106_v6 = vld [vmem:[#allocation5] sm:$0xff]  ;;  %vm204_vm1 = vcmask 261120   ;;  %v92_v55 = vlaneseq  ;;  %v1292_v0 = vmov 1.0   ;;  %s1293_s21 = smov [#allocation10]  }
  0x4c   :  { %915 = vmatprep.mubr.msk.bf16.mxu1 %vm1290_vm0, %v1289_v1  ;;  %1049 = vmatprep.subr.bf16.mxu0 %v1291_v2  ;;  %v1136_v4 = vld [vmem:[#allocation2] sm:$0xff]   ;;  %v107_v7 = vld [vmem:[#allocation5 + $0x8] sm:$0xff]  ;;  %v266_v8 = vld [vmem:[#allocation7] sm:$0xff]  ;;  %s752_s9 = sshll.u32 %s1293_s21, 4  ;;  %s753_s9 = int_to_ptr.vmem [resolvable:$true] %s752_s9 }
  0x4d   :  { %908 = vmatprep.mubr.msk.f32.mxu0 %vm1290_vm0, %v1289_v1  ;;  %96 = vperm.xlu0 %1135, %v94_v3   ;;  %v267_v9 = vld [vmem:[#allocation7 + $0x8] sm:$0xff]  ;;  %v1050_v10 = vpack.c.bf16 %v107_v7, %v106_v6  ;;  %v108_v11 = vld [vmem:[#allocation5 + $0x10] sm:$0xff]  ;;  %v109_v12 = vld [vmem:[#allocation5 + $0x18] sm:$0xff]  ;;  %v1446_v58 = vand.u32 127, %v92_v55  ;;  %p1255_p5 = scmp.lt.s32.totalorder %s753_s9, %s753_s9 }
  0x4e   :  { %912 = vmatpush3.bf16.msra.mxu1 %v1136_v4  ;;  %v1053_v13 = vpack.c.bf16 %v109_v12, %v108_v11  ;;  %v101_v14 = vld [vmem:[%s1587_s0] sm:$0xf]  ;;  %v1074_v15 = vpack.c.bf16 %v267_v9, %v266_v8  ;;  %v110_v16 = vld [vmem:[#allocation5 + $0x20] sm:$0xff]  ;;  %v111_v17 = vld [vmem:[#allocation5 + $0x28] sm:$0xff] }
  0x4f   :  { %913 = vmatprep.subr.bf16.mxu1 %v1289_v1  ;;  %1051 = vmatpush3.bf16.msra.mxu0 %v1050_v10  ;;  %v268_v18 = vld [vmem:[#allocation7 + $0x10] sm:$0xff]  ;;  %v269_v19 = vld [vmem:[#allocation7 + $0x18] sm:$0xff]  ;;  %v1056_v20 = vpack.c.bf16 %v111_v17, %v110_v16  ;;  %v270_v24 = vld [vmem:[#allocation7 + $0x20] sm:$0xff] }
  0x50   :  { %1052 = vmatprep.subr.bf16.mxu0 %v1291_v2  ;;  %v1077_v21 = vpack.c.bf16 %v269_v19, %v268_v18  ;;  %v112_v22 = vld [vmem:[#allocation5 + $0x30] sm:$0xff]  ;;  %v113_v23 = vld [vmem:[#allocation5 + $0x38] sm:$0xff]  ;;  %v271_v25 = vld [vmem:[#allocation7 + $0x28] sm:$0xff] }
  0x51   :  { %v1059_v26 = vpack.c.bf16 %v113_v23, %v112_v22  ;;  %v1080_v27 = vpack.c.bf16 %v271_v25, %v270_v24  ;;  %v114_v28 = vld [vmem:[#allocation5 + $0x40] sm:$0xff]  ;;  %v115_v29 = vld [vmem:[#allocation5 + $0x48] sm:$0xff]  ;;  %v272_v30 = vld [vmem:[#allocation7 + $0x30] sm:$0xff] }
  0x52   :  { %914 = vmatpush3.bf16.msra.mxu1 %v1137_v5  ;;  %v273_v31 = vld [vmem:[#allocation7 + $0x38] sm:$0xff]  ;;  %v116_v32 = vld [vmem:[#allocation5 + $0x50] sm:$0xff]  ;;  %v1062_v34 = vpack.c.bf16 %v115_v29, %v114_v28  ;;  %v274_v36 = vld [vmem:[#allocation7 + $0x40] sm:$0xff] }
  0x53   :  { %1073 = vmatprep.subr.bf16.mxu1 %v1291_v2  ;;  %1054 = vmatpush3.bf16.msra.mxu0 %v1053_v13  ;;  %v117_v33 = vld [vmem:[#allocation5 + $0x58] sm:$0xff]  ;;  %v1083_v35 = vpack.c.bf16 %v273_v31, %v272_v30  ;;  %v275_v37 = vld [vmem:[#allocation7 + $0x48] sm:$0xff]  ;;  %v118_v38 = vld [vmem:[#allocation5 + $0x60] sm:$0xff] }
  0x54   :  { %1055 = vmatprep.subr.bf16.mxu0 %v1291_v2  ;;  %v119_v39 = vld [vmem:[#allocation5 + $0x68] sm:$0xff]  ;;  %v1065_v40 = vpack.c.bf16 %v117_v33, %v116_v32  ;;  %v1086_v41 = vpack.c.bf16 %v275_v37, %v274_v36  ;;  %v276_v42 = vld [vmem:[#allocation7 + $0x50] sm:$0xff]  ;;  %v277_v43 = vld [vmem:[#allocation7 + $0x58] sm:$0xff] }
  0x55   :  { %916 = vmatmul.mubr.msk.bf16.vlgmr.msra.gmra.mrb[0].mxu1 %vm204_vm1, %v101_v14  ;;  %v120_v44 = vld [vmem:[#allocation5 + $0x70] sm:$0xff]  ;;  %v121_v45 = vld [vmem:[#allocation5 + $0x78] sm:$0xff]  ;;  %v1068_v46 = vpack.c.bf16 %v119_v39, %v118_v38  ;;  %v1089_v47 = vpack.c.bf16 %v277_v43, %v276_v42  ;;  %v278_v48 = vld [vmem:[#allocation7 + $0x60] sm:$0xff] }
  0x56   :  { %1075 = vmatpush3.bf16.msra.mxu1 %v1074_v15  ;;  %951 = vmatprep.mubr.msk.f32.mxu1 %vm1290_vm0, %v1289_v1  ;;  %v279_v49 = vld [vmem:[#allocation7 + $0x68] sm:$0xff]  ;;  %v280_v50 = vld [vmem:[#allocation7 + $0x70] sm:$0xff]  ;;  %v281_v51 = vld [vmem:[#allocation7 + $0x78] sm:$0xff]  ;;  %v1071_v52 = vpack.c.bf16 %v121_v45, %v120_v44 }
  0x57   :  { %1076 = vmatprep.subr.bf16.mxu1 %v1291_v2  ;;  %1057 = vmatpush3.bf16.msra.mxu0 %v1056_v20  ;;  %v1092_v53 = vpack.c.bf16 %v279_v49, %v278_v48  ;;  %v1095_v54 = vpack.c.bf16 %v281_v51, %v280_v50  ;;  %v458_v56 = vld [vmem:[#allocation8] sm:$0xff]  ;;  %v459_v57 = vld [vmem:[#allocation8 + $0x8] sm:$0xff]  ;;  %v460_v61 = vld [vmem:[#allocation8 + $0x10] sm:$0xff] }
  0x58   :  { %1058 = vmatprep.subr.bf16.mxu0 %v1291_v2  ;;  %v1098_v59 = vpack.c.bf16 %v459_v57, %v458_v56  ;;  %v461_v62 = vld [vmem:[#allocation8 + $0x18] sm:$0xff]  ;;  %v1138_v63 = vld [vmem:[%s1590_s3] sm:$0xff]   ;;  %v462_v4 = vld [vmem:[#allocation8 + $0x20] sm:$0xff] }
  0x59   :  { %v1101_v3 = vpack.c.bf16 %v461_v62, %v460_v61  ;;  %v463_v5 = vld [vmem:[#allocation8 + $0x28] sm:$0xff]  ;;  %v1139_v6 = vld [vmem:[%s1590_s3 + $0x8] sm:$0xff]   ;;  %v464_v8 = vld [vmem:[#allocation8 + $0x30] sm:$0xff] }
  0x5a   :  { %1078 = vmatpush3.bf16.msra.mxu1 %v1077_v21  ;;  %v1104_v7 = vpack.c.bf16 %v463_v5, %v462_v4  ;;  %v465_v9 = vld [vmem:[#allocation8 + $0x38] sm:$0xff]  ;;  %v1140_v10 = vld [vmem:[%s1590_s3 + $0x10] sm:$0xff]   ;;  %v467_v13 = vld [vmem:[#allocation8 + $0x48] sm:$0xff] }
  0x5b   :  { %1079 = vmatprep.subr.bf16.mxu1 %v1291_v2  ;;  %1060 = vmatpush3.bf16.msra.mxu0 %v1059_v26  ;;  %v1107_v11 = vpack.c.bf16 %v465_v9, %v464_v8  ;;  %v466_v12 = vld [vmem:[#allocation8 + $0x40] sm:$0xff]  ;;  %v1141_v14 = vld [vmem:[%s1590_s3 + $0x18] sm:$0xff]   ;;  %v468_v16 = vld [vmem:[#allocation8 + $0x50] sm:$0xff] }
  0x5c   :  { %1061 = vmatprep.subr.bf16.mxu0 %v1291_v2  ;;  %v1110_v15 = vpack.c.bf16 %v467_v13, %v466_v12  ;;  %v469_v17 = vld [vmem:[#allocation8 + $0x58] sm:$0xff]  ;;  %v1142_v18 = vld [vmem:[%s1590_s3 + $0x20] sm:$0xff]   ;;  %v470_v20 = vld [vmem:[#allocation8 + $0x60] sm:$0xff] }
  0x5d   :  { %v1113_v19 = vpack.c.bf16 %v469_v17, %v468_v16  ;;  %v471_v21 = vld [vmem:[#allocation8 + $0x68] sm:$0xff]  ;;  %v1143_v22 = vld [vmem:[%s1590_s3 + $0x28] sm:$0xff]   ;;  %v472_v24 = vld [vmem:[#allocation8 + $0x70] sm:$0xff] }
  0x5e   :  { %1081 = vmatpush3.bf16.msra.mxu1 %v1080_v27  ;;  %v1116_v23 = vpack.c.bf16 %v471_v21, %v470_v20  ;;  %v473_v25 = vld [vmem:[#allocation8 + $0x78] sm:$0xff]  ;;  %v1144_v27 = vld [vmem:[%s1590_s3 + $0x30] sm:$0xff]   ;;  %v1146_v38 = vld [vmem:[%s1591_s4] sm:$0xff]  }
  0x5f   :  { %1082 = vmatprep.subr.bf16.mxu1 %v1291_v2  ;;  %1063 = vmatpush3.bf16.msra.mxu0 %v1062_v34  ;;  %v1119_v26 = vpack.c.bf16 %v473_v25, %v472_v24  ;;  %v1149_v42 = vld [vmem:[%s1591_s4 + $0x18] sm:$0xff]   ;;  %v1150_v43 = vld [vmem:[%s1591_s4 + $0x20] sm:$0xff]   ;;  %v1151_v44 = vld [vmem:[%s1591_s4 + $0x28] sm:$0xff]  }
  0x60   :  { %1064 = vmatprep.subr.bf16.mxu0 %v1291_v2  ;;  %v1153_v48 = vld [vmem:[%s1591_s4 + $0x38] sm:$0xff]   ;;  %v1154_v49 = vld [vmem:[%s1592_s5] sm:$0xff]   ;;  %v1155_v50 = vld [vmem:[%s1592_s5 + $0x8] sm:$0xff]  }
  0x61   :  { %v1156_v51 = vld [vmem:[%s1592_s5 + $0x10] sm:$0xff]   ;;  %v786_v9 = vld [vmem:[%s1593_s6] ss:$0 sm:$0xff] }
  0x62   :  { %1084 = vmatpush3.bf16.msra.mxu1 %v1083_v35  ;;  %v1160_v62 = vld [vmem:[%s1592_s5 + $0x30] sm:$0xff]  }
  0x63   :  { %1085 = vmatprep.subr.bf16.mxu1 %v1291_v2  ;;  %1066 = vmatpush3.bf16.msra.mxu0 %v1065_v40  ;;  %v1147_v40 = vld [vmem:[%s1591_s4 + $0x8] sm:$0xff]  }
  0x64   :  { %1067 = vmatprep.subr.bf16.mxu0 %v1291_v2 }
  0x66   :  { %1087 = vmatpush3.bf16.msra.mxu1 %v1086_v41  ;;  %v1148_v41 = vld [vmem:[%s1591_s4 + $0x10] sm:$0xff]  }
  0x67   :  { %1088 = vmatprep.subr.bf16.mxu1 %v1291_v2  ;;  %1069 = vmatpush3.bf16.msra.mxu0 %v1068_v46 }
  0x68   :  { %1070 = vmatprep.subr.bf16.mxu0 %v1291_v2 }
  0x6a   :  { %1090 = vmatpush3.bf16.msra.mxu1 %v1089_v47  ;;  %v1152_v47 = vld [vmem:[%s1591_s4 + $0x30] sm:$0xff]  }
  0x6b   :  { %1091 = vmatprep.subr.bf16.mxu1 %v1291_v2  ;;  %1072 = vmatpush3.bf16.msra.mxu0 %v1071_v52  ;;  %v1157_v52 = vld [vmem:[%s1592_s5 + $0x18] sm:$0xff]  }
  0x6c   :  { %954 = vmatprep.subr.bf16.mxu0 %v1289_v1 }
  0x6e   :  { %1093 = vmatpush3.bf16.msra.mxu1 %v1092_v53  ;;  %v1158_v53 = vld [vmem:[%s1592_s5 + $0x20] sm:$0xff]  }
  0x6f   :  { %1094 = vmatprep.subr.bf16.mxu1 %v1291_v2 }
  0x72   :  { %1096 = vmatpush3.bf16.msra.mxu1 %v1095_v54  ;;  %v1159_v54 = vld [vmem:[%s1592_s5 + $0x28] sm:$0xff]  }
  0x73   :  { %1097 = vmatprep.subr.bf16.mxu1 %v1291_v2 }
  0xcc   :  { %v1448_v60 = vpop.permute.xlu0 %96 }
  0xcd   :  { %vm98_vm2 = vcmp.eq.s32.totalorder %v1446_v58, %v1448_v60 }
  0xce   :  { %909 = vmatmul.mubr.msk.f32.vlgmr.msra.gmra.mrb[0].mxu0 %vm98_vm2, %v1292_v0  ;;  %952 = vmatmul.mubr.msk.f32.vlgmr.msra.gmra.mrb[4].mxu1 %vm98_vm2, %v1292_v0 }
  0xcf   :  { %1099 = vmatpush3.bf16.msra.mxu1 %v1098_v59  ;;  %1006 = vmatprep.mubr.msk.f32.mxu1 %vm1290_vm0, %v1289_v1 }
  0xd0   :  { %1100 = vmatprep.subr.bf16.mxu1 %v1291_v2  ;;  %955 = vmatpush3.bf16.msra.mxu0 %v1138_v63  ;;  %v1161_v63 = vld [vmem:[%s1592_s5 + $0x38] sm:$0xff]   ;;  %s1250_s5 = scalar_lea.vmem %s753_s9, 128 }
  0xd1   :  { %956 = vmatprep.subr.bf16.mxu0 %v1289_v1  ;;  %970 = vmatprep.mubr.msk.bf16.mxu0 %vm1290_vm0, %v1289_v1  ;;  %p1251_p4 = scmp.ne.s32.totalorder %s753_s9, %s1250_s5  ;;  %p1256_p6 = scmp.lt.s32.totalorder %s1250_s5, %s1250_s5 }
  0xd3   :  { %1102 = vmatpush3.bf16.msra.mxu1 %v1101_v3  ;;  %p1257_p7 = por %p1256_p6, %p1255_p5 }
  0xd4   :  { %1103 = vmatprep.subr.bf16.mxu1 %v1291_v2  ;;  %957 = vmatpush3.bf16.msra.mxu0 %v1139_v6 }
  0xd5   :  { %958 = vmatprep.subr.bf16.mxu0 %v1289_v1  ;;  %p1258_p8 = pnand %p1257_p7, %p1251_p4 }
  0xd7   :  { %1105 = vmatpush3.bf16.msra.mxu1 %v1104_v7 }
  0xd8   :  { %1106 = vmatprep.subr.bf16.mxu1 %v1291_v2  ;;  %959 = vmatpush3.bf16.msra.mxu0 %v1140_v10 }
  0xd9   :  { %960 = vmatprep.subr.bf16.mxu0 %v1289_v1 }
  0xdb   :  { %1108 = vmatpush3.bf16.msra.mxu1 %v1107_v11 }
  0xdc   :  { %1109 = vmatprep.subr.bf16.mxu1 %v1291_v2  ;;  %961 = vmatpush3.bf16.msra.mxu0 %v1141_v14 }
  0xdd   :  { %962 = vmatprep.subr.bf16.mxu0 %v1289_v1 }
  0xdf   :  { %1111 = vmatpush3.bf16.msra.mxu1 %v1110_v15 }
  0xe0   :  { %1112 = vmatprep.subr.bf16.mxu1 %v1291_v2  ;;  %963 = vmatpush3.bf16.msra.mxu0 %v1142_v18 }
  0xe1   :  { %964 = vmatprep.subr.bf16.mxu0 %v1289_v1 }
  0xe3   :  { %1114 = vmatpush3.bf16.msra.mxu1 %v1113_v19 }
  0xe4   :  { %1115 = vmatprep.subr.bf16.mxu1 %v1291_v2  ;;  %965 = vmatpush3.bf16.msra.mxu0 %v1143_v22 }
  0xe5   :  { %966 = vmatprep.subr.bf16.mxu0 %v1289_v1 }
  0xe7   :  { %1117 = vmatpush3.bf16.msra.mxu1 %v1116_v23 }
  0xe8   :  { %1118 = vmatprep.subr.bf16.mxu1 %v1291_v2  ;;  %967 = vmatpush3.bf16.msra.mxu0 %v1144_v27  ;;  %v1145_v2 = vld [vmem:[%s1590_s3 + $0x38] sm:$0xff]  }
  0xe9   :  { %968 = vmatprep.subr.bf16.mxu0 %v1289_v1 }
  0xeb   :  { %1120 = vmatpush3.bf16.msra.mxu1 %v1119_v26 }
  0xec   :  { %1029 = vmatprep.subr.bf16.mxu1 %v1289_v1  ;;  %969 = vmatpush3.bf16.msra.mxu0 %v1145_v2 }
  0xed   :  { %1009 = vmatprep.subr.bf16.mxu0 %v1289_v1 }
  0xee   :  { %1007 = vmatmul.mubr.msk.f32.vlgmr.msra.gmra.mrb[6].mxu1 %vm98_vm2, %v1292_v0 }
  0xef   :  { %1045 = vmatprep.mubr.msk.bf16.mxu1 %vm1290_vm0, %v1289_v1  ;;  %1030 = vmatpush3.bf16.msra.mxu1 %v1154_v49 }
  0xf0   :  { %1031 = vmatprep.subr.bf16.mxu1 %v1289_v1 }
  0xf3   :  { %1032 = vmatpush3.bf16.msra.mxu1 %v1155_v50 }
  0xf4   :  { %1033 = vmatprep.subr.bf16.mxu1 %v1289_v1 }
  0xf7   :  { %1034 = vmatpush3.bf16.msra.mxu1 %v1156_v51 }
  0xf8   :  { %1035 = vmatprep.subr.bf16.mxu1 %v1289_v1 }
  0xfb   :  { %1036 = vmatpush3.bf16.msra.mxu1 %v1157_v52 }
  0xfc   :  { %1037 = vmatprep.subr.bf16.mxu1 %v1289_v1 }
  0xff   :  { %1038 = vmatpush3.bf16.msra.mxu1 %v1158_v53 }
 0x100   :  { %1039 = vmatprep.subr.bf16.mxu1 %v1289_v1 }
 0x103   :  { %1040 = vmatpush3.bf16.msra.mxu1 %v1159_v54 }
 0x104   :  { %1041 = vmatprep.subr.bf16.mxu1 %v1289_v1 }
 0x107   :  { %1042 = vmatpush3.bf16.msra.mxu1 %v1160_v62 }
 0x108   :  { %1043 = vmatprep.subr.bf16.mxu1 %v1289_v1 }
 0x10b   :  { %1044 = vmatpush3.bf16.msra.mxu1 %v1161_v63 }
 0x128   :  { %v242_v28 = vpop.f32.mrb[0].mxu1 }
 0x129   :  { %v917_v29 = vpop.f32.mrb[1].mxu1 }
 0x12a   :  { %v245_v30 = vpop.f32.mrb[2].mxu1 }
 0x12b   :  { %v918_v31 = vpop.f32.mrb[3].mxu1 }
 0x1a1   :  { %v188_v32 = vpop.f32.mrb[0].mxu0  ;;  %v348_v33 = vpop.f32.mrb[4].mxu1 }
 0x1a2   :  { %v243_v34 = vadd.f32 %v242_v28, %v188_v32  ;;  %v910_v35 = vpop.f32.mrb[1].mxu0  ;;  %v953_v36 = vpop.f32.mrb[5].mxu1 }
 0x1a4   :  { %v248_v37 = vmax.f32 %v243_v34, 0.0 }
 0x1a6   :  { %v249_v39 = vpack.c.bf16 %v248_v37, %v248_v37 }
 0x1a8   :  { %971 = vmatmul.mubr.bf16.vlgmr.msra.gmra.mrb[4].mxu0 %v249_v39 }
 0x1a9   :  { %1010 = vmatpush3.bf16.msra.mxu0 %v1146_v38  ;;  %1025 = vmatprep.mubr.msk.bf16.mxu0 %vm1290_vm0, %v1289_v1 }
 0x1aa   :  { %1011 = vmatprep.subr.bf16.mxu0 %v1289_v1 }
 0x1ad   :  { %1012 = vmatpush3.bf16.msra.mxu0 %v1147_v40 }
 0x1ae   :  { %1013 = vmatprep.subr.bf16.mxu0 %v1289_v1 }
 0x1b1   :  { %1014 = vmatpush3.bf16.msra.mxu0 %v1148_v41 }
 0x1b2   :  { %1015 = vmatprep.subr.bf16.mxu0 %v1289_v1 }
 0x1b5   :  { %1016 = vmatpush3.bf16.msra.mxu0 %v1149_v42 }
 0x1b6   :  { %1017 = vmatprep.subr.bf16.mxu0 %v1289_v1 }
 0x1b9   :  { %1018 = vmatpush3.bf16.msra.mxu0 %v1150_v43 }
 0x1ba   :  { %1019 = vmatprep.subr.bf16.mxu0 %v1289_v1 }
 0x1bd   :  { %1020 = vmatpush3.bf16.msra.mxu0 %v1151_v44 }
 0x1be   :  { %1021 = vmatprep.subr.bf16.mxu0 %v1289_v1 }
 0x1c1   :  { %v540_v45 = vpop.f32.mrb[6].mxu1  ;;  %1022 = vmatpush3.bf16.msra.mxu0 %v1152_v47 }
 0x1c2   :  { %v1008_v46 = vpop.f32.mrb[7].mxu1  ;;  %1023 = vmatprep.subr.bf16.mxu0 %v1289_v1 }
 0x1c5   :  { %1024 = vmatpush3.bf16.msra.mxu0 %v1153_v48 }
 0x27b   :  { %v434_v55 = vpop.f32.mrb[4].mxu0 }
 0x27c   :  { %v435_v56 = vadd.f32 %v434_v55, %v348_v33  ;;  %v972_v57 = vpop.f32.mrb[5].mxu0 }
 0x27d   :  { %v437_v58 = vpop.f32.mrb[6].mxu0 }
 0x27e   :  { %v440_v59 = vmax.f32 %v435_v56, 0.0  ;;  %v973_v60 = vpop.f32.mrb[7].mxu0 }
 0x280   :  { %v441_v61 = vpack.c.bf16 %v440_v59, %v440_v59 }
 0x282   :  { %1026 = vmatmul.mubr.bf16.vlgmr.msra.gmra.mrb[8].mxu0 %v441_v61 }
 0x355   :  { %v626_v0 = vpop.f32.mrb[8].mxu0 }
 0x356   :  { %v627_v3 = vadd.f32 %v626_v0, %v540_v45  ;;  %v1027_v4 = vpop.f32.mrb[9].mxu0 }
 0x357   :  { %v629_v5 = vpop.f32.mrb[10].mxu0 }
 0x358   :  { %v632_v6 = vmax.f32 %v627_v3, 0.0  ;;  %v1028_v7 = vpop.f32.mrb[11].mxu0 }
 0x35a   :  { %v633_v8 = vpack.c.bf16 %v632_v6, %v632_v6 }
 0x35c   :  { %1046 = vmatmul.mubr.bf16.vlgmr.msra.gmra.mrb[8].mxu1 %v633_v8 }
 0x42f   :  { %v739_v1 = vpop.f32.mrb[8].mxu1 }
 0x430   :  { %v740_v10 = vadd.f32 %v786_v9, %v739_v1  ;;  %v1047_v11 = vpop.f32.mrb[9].mxu1 }
 0x431   :  { %v742_v12 = vpop.f32.mrb[10].mxu1 }
 0x432   :  { %745 = vst.msk [vmem:[#allocation10] sm:$0xff] %vm204_vm1, %v740_v10  ;;  %v1048_v13 = vpop.f32.mrb[11].mxu1 }
 0x433   :  { %1261 = shalt.err (!%p1258_p8)
}
 0x434   :  { %s1262_s6 = scalar_lea.hbm %s1597_s10, 128 }
 0x435   :  { %p1263_p9 = scmp.ne.s32.totalorder %s1597_s10, %s1262_s6  ;;  %p1266_p10 = scmp.lt.u32.totalorder %s1262_s6, %s1597_s10 }
 0x437   :  { %p1268_p11 = pnand %p1266_p10, %p1263_p9 }
 0x439   :  { %1271 = shalt.err (!%p1268_p11)
}
 0x43a   :  { %755 = dma.vmem_to_hbm [thread:$0]  %s753_s9, 128, %s1597_s10, [#allocation4]  }
 0x43b   :  { %1278 = dma.done.wait [#allocation4], 128  }
 0x43c   :  { %1279 = vsyncadd [#allocation4], 4294967168 }
 0x43d   :  { %759 = vsyncpa [#allocation3], 1 }
 0x43e   :  { %760 = vsyncpa [#allocation6], 1 }
 0x43f   :  { %761 = vsyncpa [#allocation9], 1 }
 0x440   :  { %762 = vsyncpa [#allocation4], 1 }

</bundles_post_ra>
